<compile_context>
chip_gen: v7x
topology: tpu7x:2x2x1
jax: 0.10.0
libtpu: 0.0.40
codegen_flags: <defaults>
</compile_context>

<pallas_src>
import jax
import jax.numpy as jnp
from jax.experimental import pallas as pl
from jax.experimental.pallas import tpu as pltpu


_MAX_BLOCK_SPATIAL = 128 * 1024   # Ht*W cap per block: 5*128K*4B = 2.5 MiB/buffer
_SMALL_HW_FAST_PATH = 4096        # below this H*W, plain jnp beats a kernel launch


def _scale_exp_cat_kernel(scale_ref, x_ref, o_ref):
    # scale_ref: SMEM (1,) f32 scalar
    # x_ref:     VMEM (1, 5, Ht, W) input block (channels 0..4 of one sample)
    # o_ref:     VMEM (1, 5, Ht, W) output block (f32)
    s = scale_ref[0]
    x = x_ref[...].astype(jnp.float32)  # matches torch .float() promotion
    # Channel dim (axis 1) is untiled in this block layout, so the concat is
    # free vreg bookkeeping and the result is written with ONE full-block store.
    o_ref[...] = jnp.concatenate(
        [jnp.exp(x[:, :4] * s), x[:, 4:5]], axis=1)


def _round_up(a, m):
    return -(-a // m) * m


def _choose_h_tile(H, W, N, sub):
    """Pick Ht (multiple of `sub`, or full H) and the number of H tiles."""
    max_ht = max(sub, (_MAX_BLOCK_SPATIAL // max(W, 1)) // sub * sub)
    if H <= max_ht:
        ht = H                                    # full extent: always legal
    else:
        n_tiles = -(-H // max_ht)                 # split evenly, no sliver tail
        ht = min(_round_up(-(-H // n_tiles), sub), max_ht)
    h_tiles = -(-H // ht)
    # v7x megacore balance: prefer an even total number of grid steps.
    if (N * h_tiles) % 2 == 1 and H >= 2 * sub:
        ht2 = _round_up(-(-H // (h_tiles + 1)), sub)
        if -(-H // ht2) > h_tiles:
            ht = ht2
            h_tiles = -(-H // ht2)
    return ht, h_tiles


def scale_forward(x, scale, *, small_hw_fast_path=_SMALL_HW_FAST_PATH,
                  force_pallas=False):
    """JAX/Pallas equivalent of mmdet Scale.forward.

    x: (N, C, H, W) with C >= 5.  Returns float32 (N, 5, H, W) equal to
    torch.cat([(x[:, :4] * scale).float().exp(), x[:, 4:5]], dim=1).
    """
    N, C, H, W = x.shape
    if C < 5:
        raise ValueError("Scale.forward requires at least 5 channels")
    if C > 5:
        # Only channels 0..4 are ever read; drop the rest before any DMA.
        x = x[:, :5]

    s = jnp.asarray(scale, dtype=jnp.float32)

    if not force_pallas and H * W < small_hw_fast_path:
        # Tiny FPN levels: launch overhead dominates; XLA fuses exp+concat fine.
        return jnp.concatenate(
            [jnp.exp(x[:, :4].astype(jnp.float32) * s),
             x[:, 4:5].astype(jnp.float32)], axis=1)

    # Sublane multiple for the input dtype (8 for f32, 16 for bf16, 32 for i8).
    sub = max(8, 32 // jnp.dtype(x.dtype).itemsize)
    ht, h_tiles = _choose_h_tile(H, W, N, sub)
    scale_arr = jnp.reshape(s, (1,))

    return pl.pallas_call(
        _scale_exp_cat_kernel,
        out_shape=jax.ShapeDtypeStruct((N, 5, H, W), jnp.float32),
        grid=(N, h_tiles),
        in_specs=[
            pl.BlockSpec(memory_space=pltpu.SMEM),                    # scale
            pl.BlockSpec((1, 5, ht, W), lambda n, h: (n, 0, h, 0)),   # x block
        ],
        out_specs=pl.BlockSpec((1, 5, ht, W), lambda n, h: (n, 0, h, 0)),
        compiler_params=pltpu.CompilerParams(
            dimension_semantics=("parallel", "parallel"),
            vmem_limit_bytes=32 * 1024 * 1024),
    )(scale_arr, x)


if __name__ == "__main__":
    key = jax.random.PRNGKey(0)
    scale_param = 1.0   # matches nn.Parameter(torch.tensor(1.0))

    # Small NCHW input; the module reads channels 0..4, so C = 5.
    x = jax.random.normal(key, (2, 5, 16, 16), dtype=jnp.float32)

    # Force the Pallas path so the kernel itself is exercised at this tiny size
    # (the default dispatch would take the small-HW jnp fast path).
    out = scale_forward(x, scale_param, force_pallas=True)
    out = jax.block_until_ready(out)

    ref = jnp.concatenate(
        [jnp.exp(x[:, :4] * scale_param), x[:, 4:5]], axis=1)
    assert out.shape == (2, 5, 16, 16)
    assert out.dtype == jnp.float32
    assert jnp.allclose(out, ref, atol=1e-6, rtol=1e-6), "mismatch (forced pallas)"

    # Slightly larger map: natural Pallas dispatch + even-grid split for v7x.
    x2 = jax.random.normal(jax.random.PRNGKey(1), (1, 5, 40, 128), dtype=jnp.float32)
    out2 = jax.block_until_ready(scale_forward(x2, scale_param))
    ref2 = jnp.concatenate(
        [jnp.exp(x2[:, :4] * scale_param), x2[:, 4:5]], axis=1)
    assert jnp.allclose(out2, ref2, atol=1e-6, rtol=1e-6), "mismatch (pallas)"

    # Tiny-map default dispatch (jnp fast path) for coverage.
    out3 = jax.block_until_ready(scale_forward(x, scale_param))
    assert jnp.allclose(out3, ref, atol=1e-6, rtol=1e-6), "mismatch (fast path)"

    print("KERNEL_OK")
</pallas_src>

<mosaic_0001>
module attributes {stable_mosaic.version = 11 : i64} {
  func.func @_scale_exp_cat_kernel(%arg0: i32, %arg1: i32, %arg2: memref<1xf32, #tpu.memory_space<smem>>, %arg3: memref<1x5x16x16xf32, #tpu.memory_space<vmem>>, %arg4: memref<1x5x16x16xf32, #tpu.memory_space<vmem>>) attributes {dimension_semantics = [#tpu.dimension_semantics<parallel>, #tpu.dimension_semantics<parallel>], iteration_bounds = array<i64: 2, 1>, scalar_prefetch = 0 : i64, scratch_operands = 0 : i64, tpu.core_type = #tpu.core_type<tc>, window_params = [{transform_indices = @transform_0, window_bounds = array<i64: 1>}, {transform_indices = @transform_1, window_bounds = array<i64: 1, 5, 16, 16>}, {transform_indices = @transform_2, window_bounds = array<i64: 1, 5, 16, 16>}]} {
    %c0 = arith.constant 0 : index
    %0 = memref.load %arg2[%c0] : memref<1xf32, #tpu.memory_space<smem>>
    %c0_0 = arith.constant 0 : index
    %c0_1 = arith.constant 0 : index
    %c0_2 = arith.constant 0 : index
    %c0_3 = arith.constant 0 : index
    %1 = vector.load %arg3[%c0_0, %c0_1, %c0_2, %c0_3] : memref<1x5x16x16xf32, #tpu.memory_space<vmem>>, vector<1x5x16x16xf32>
    %2 = vector.extract_strided_slice %1 {offsets = [0, 0, 0, 0], sizes = [1, 4, 16, 16], strides = [1, 1, 1, 1]} : vector<1x5x16x16xf32> to vector<1x4x16x16xf32>
    %3 = vector.broadcast %0 : f32 to vector<1x4x16x16xf32>
    %4 = arith.mulf %2, %3 : vector<1x4x16x16xf32>
    %5 = math.exp %4 : vector<1x4x16x16xf32>
    %6 = vector.extract_strided_slice %1 {offsets = [0, 4, 0, 0], sizes = [1, 1, 16, 16], strides = [1, 1, 1, 1]} : vector<1x5x16x16xf32> to vector<1x1x16x16xf32>
    %7 = tpu.concatenate %5, %6 in 1 : vector<1x4x16x16xf32>, vector<1x1x16x16xf32> -> vector<1x5x16x16xf32>
    %c0_4 = arith.constant 0 : index
    %c0_5 = arith.constant 0 : index
    %c0_6 = arith.constant 0 : index
    %c0_7 = arith.constant 0 : index
    %8 = vector.load %arg4[%c0_4, %c0_5, %c0_6, %c0_7] : memref<1x5x16x16xf32, #tpu.memory_space<vmem>>, vector<1x5x16x16xf32>
    tpu.vector_store %arg4[%c0_4, %c0_5, %c0_6, %c0_7], %7 {strides = array<i32>} : memref<1x5x16x16xf32, #tpu.memory_space<vmem>>, vector<1x5x16x16xf32>,
    return
  }
  func.func @transform_0(%arg0: i32, %arg1: i32) -> i32 {
    %c0_i32 = arith.constant 0 : i32
    %c0_i32_0 = arith.constant 0 : i32
    return %c0_i32 : i32
  }
  func.func @transform_1(%arg0: i32, %arg1: i32) -> (i32, i32, i32, i32) {
    %c0_i32 = arith.constant 0 : i32
    %c0_i32_0 = arith.constant 0 : i32
    %c0_i32_1 = arith.constant 0 : i32
    return %arg0, %c0_i32, %arg1, %c0_i32_0 : i32, i32, i32, i32
  }
  func.func @transform_2(%arg0: i32, %arg1: i32) -> (i32, i32, i32, i32) {
    %c0_i32 = arith.constant 0 : i32
    %c0_i32_0 = arith.constant 0 : i32
    %c0_i32_1 = arith.constant 0 : i32
    return %arg0, %c0_i32, %arg1, %c0_i32_0 : i32, i32, i32, i32
  }
}

</mosaic_0001>

<bundles_post_ra>
// kernel: tpu_custom_call.1
= control target key start
LH: loop header
LB: loop body
LE: loop exit
PB: predicated region body
PF: predicated region fallthrough
CT: control target
= control target key end

     0   :  { %s776_s0 = inlined_call_operand.<no memory space> [shape: f32[1], index: 0, kind: input, shape index: {}]   ;;  %s777_s1 = inlined_call_operand.hbm [shape: f32[2,5,16,16], index: 1, kind: input, shape index: {}]   ;;  %s778_s2 = inlined_call_operand.hbm [shape: f32[2,5,16,16], index: 2, kind: output, shape index: {}]  }
   0x1   :  { %7 = sst [smem:[#allocation2]] %s776_s0 }
   0x2   :  { %8 = vsyncpa [#allocation4], 0 }
   0x3   :  { %10 = vsyncpa [#allocation4 + $0x1], 0 }
   0x4   :  { %11 = vsyncpa [#allocation5], 0 }
   0x5   :  { %13 = vsyncpa [#allocation5 + $0x1], 0  ;;  %s566_s11 = smov 0   ;;  %s568_s12 = smov 0  }
   0x6   :  { %s570_s13 = smov 0   ;;  %s572_s14 = smov 0  }
   0x7   :  { %s574_s15 = smov 0   ;;  %s576_s16 = smov 0  }
   0x8 LB: > { %s333_s0 = sadd.s32 4294967295, %s540_s16   ;;  %s334_s17 = sadd.s32 4294967294, %s540_s16   ;;  %s540_s16 = sphi %s576_s16, %s19_s16   ;;  %s536_s15 = sphi %s574_s15, %s793_s15   ;;  %s532_s14 = sphi %s572_s14, %s792_s14   ;;  %s528_s13 = sphi %s570_s13, %s791_s13   ;;  %s524_s12 = sphi %s568_s12, %s790_s12   ;;  %s520_s11 = sphi %s566_s11, %s789_s11  }
   0x9   : > { %s31_s18 = sadd.s32 1, %s536_s15  ;;  %s61_s19 = sadd.s32 1, %s528_s13 }
   0xa   : > { %p33_p0 = scmp.ge.s32.totalorder %s31_s18, 2  ;;  %p68_p1 = scmp.ne.s32.totalorder %s528_s13, %s524_s12 }
   0xb   : > { %p69_p2 = scmp.eq.s32.totalorder %s540_s16, 0  ;;  %p74_p3 = scmp.ne.s32.totalorder %s524_s12, %s520_s11 }
   0xc   : > { %s795_s18 = smov (%p33_p0, %s31_s18), 0  ;;  %p75_p5 = scmp.eq.s32.totalorder %s333_s0, 0 }
   0xd   : > { %p607_p4 = por %p69_p2, %p68_p1  ;;  %s56_s21 = ssub.s32 %s536_s15, %s795_s18 }
   0xe   : > { %p100_p6 = scmp.eq.s32.totalorder %s333_s0, 1  ;;  %p59_p7 = scmp.eq.s32.totalorder %s56_s21, 0 }
   0xf   : > { %p613_p8 = por %p75_p5, %p74_p3  ;;  %p106_p10 = scmp.eq.s32.totalorder %s334_s17, 1 }
  0x10   : > { %p617_p9 = por %p100_p6, %p68_p1  ;;  %p358_p13 = scmp.lt.s32.totalorder %s540_s16, 2 }
  0x11   : > { %s622_s24 = scalar_select %p59_p7, %s528_s13, %s61_s19  }
  0x12   : > { %s782_s23 = scalar_select %p617_p9, 1, 0 }
  0x13   : > { %p624_p11 = por %p106_p10, %p74_p3  ;;  %s129_s26 = sand.u32 1, %s528_s13  }
  0x14   : > { %s342_s27 = smul.u32 80, %s129_s26  ;;  %p634_p0 = pnand %p358_p13, %p607_p4 }
  0x15   : > { %s783_s25 = scalar_select %p624_p11, 1, 0 }
  0x16   : > { %s343_s28 = smul.u32 1280, %s536_s15  ;;  %s133_s5 = scalar_lea.vmem [#allocation3], %s342_s27 }
  0x17   : > { %s142_s6 = sshll.u32 %s133_s5, 4  ;;  %s646_s7 = scalar_lea.sflag [#allocation4], %s129_s26  ;;  %s643_s6 = int_to_ptr.vmem [resolvable:$true] %s142_s6 }
  0x18   : > { %s641_s4 = scalar_lea.hbm %s777_s1, %s343_s28  ;;  %p430_p3 = pneg %p634_p0 }
  0x19   : > { %s428_s8 = scalar_lea.hbm %s641_s4, 1280  ;;  %s433_s0 = scalar_lea.hbm %s777_s1, 2560 }
  0x1a   : > { %p429_p2 = scmp.ne.s32.totalorder %s641_s4, %s428_s8  ;;  %p434_p6 = scmp.lt.u32.totalorder %s641_s4, %s777_s1 }
  0x1b   : > { %p435_p7 = scmp.lt.u32.totalorder %s433_s0, %s428_s8  ;;  %p437_p13 = scmp.lt.u32.totalorder %s428_s8, %s641_s4 }
  0x1c   : > { %p431_p4 = pnand %p430_p3, %p429_p2 }
  0x1d   : > { %p436_p10 = por %p435_p7, %p434_p6 }
  0x1e   : > { %p432_p5 = pneg %p431_p4 }
  0x1f   : > { %p438_p12 = por %p437_p13, %p436_p10 }
  0x21   : > { %p439_p1 = pnand %p438_p12, %p432_p5 }
  0x23   : > { %442 = shalt.err (!%p439_p1)
}
  0x24   : > { %s443_s20 = scalar_lea.vmem %s643_s6, 1280  ;;  %s542_s21 = smov [#allocation3]  }
  0x25   : > { %p444_p2 = scmp.ne.s32.totalorder %s643_s6, %s443_s20  ;;  %s448_s26 = sshll.u32 %s542_s21, 4  ;;  %s449_s26 = int_to_ptr.vmem [resolvable:$false] %s448_s26 }
  0x26   : > { %s450_s27 = scalar_lea.vmem %s449_s26, 2560  ;;  %p451_p9 = scmp.lt.s32.totalorder %s643_s6, %s449_s26 }
  0x27   : > { %p446_p4 = pnand %p444_p2, %p430_p3  ;;  %p452_p6 = scmp.lt.s32.totalorder %s450_s27, %s443_s20 }
  0x29   : > { %p447_p11 = pneg %p446_p4  ;;  %p453_p7 = por %p452_p6, %p451_p9 }
  0x2b   : > { %p454_p10 = pnand %p453_p7, %p447_p11 }
  0x2d   : > { %457 = shalt.err (!%p454_p10)
}
  0x2e   : > { %s543_s28 = smov 128   ;;  %s544_s30 = smov 8  }
  0x2f   : > { %353 = dma.hbm_to_vmem [thread:$0]  (!%p634_p0), %s641_s4, 1280, %s643_s6, %s646_s7, %s543_s28, %s543_s28, %s544_s30  }
  0x30   : > { %p150_p12 = scmp.lt.s32.totalorder %s540_s16, 3  ;;  %p785_p1 = scmp.ge.s32.totalorder %s540_s16, 1 }
  0x32   : > { %p151_p3 = pnand %p785_p1, %p150_p12 }
  0x33   : > { %s678_s3 = sand.u32 (!%p151_p3), 1, %s524_s12  }
  0x34   : > { %154 = sbr.rel (%p151_p3) target bundleno = 104 (0x68), region = 28  ;;  %s157_s8 = scalar_lea.sflag (!%p151_p3), [#allocation4], %s678_s3 }
  0x35   : > { %s344_s5 = smul.u32 (!%p151_p3), 80, %s678_s3 }
  0x37   : > { %s682_s9 = scalar_lea.vmem (!%p151_p3), [#allocation3], %s344_s5 }
  0x3b   : > { %511 = dma.done.wait (%p613_p8), %s157_s8, 1280  }
  0x3c   : > { %513 = vsyncadd (%p613_p8), %s157_s8, 4294966016  ;;  %s183_s29 = sld [smem:[#allocation2]]  ;;  %v184_v0 = vld [vmem:[%s682_s9] sm:$0xff]  ;;  %vm219_vm0 = vcmask 130048   ;;  %v185_v2 = vld [vmem:[%s682_s9 + $0x8] sm:$0xff]  ;;  %s697_s22 = scalar_lea.vmem [#allocation6], %s344_s5 }
  0x3d   : > { %v186_v3 = vld [vmem:[%s682_s9 + $0x10] sm:$0xff]  ;;  %v187_v7 = vld [vmem:[%s682_s9 + $0x18] sm:$0xff]  ;;  %v188_v8 = vld [vmem:[%s682_s9 + $0x20] sm:$0xff]  ;;  %s246_s4 = sshll.u32 %s697_s22, 4  ;;  %s345_s6 = smul.u32 1280, %s532_s14  ;;  %s714_s4 = int_to_ptr.vmem [resolvable:$true] %s246_s4 }
  0x3e   : > { %v189_v9 = vld [vmem:[%s682_s9 + $0x28] sm:$0xff]  ;;  %v190_v13 = vld [vmem:[%s682_s9 + $0x30] sm:$0xff]  ;;  %v191_v14 = vld [vmem:[%s682_s9 + $0x38] sm:$0xff]  ;;  %s231_s0 = scalar_lea.sflag [#allocation5], %s678_s3  ;;  %s458_s17 = scalar_lea.vmem %s714_s4, 1280 }
  0x3f   : > { %v192_v15 = vld [vmem:[%s682_s9 + $0x40] sm:$0xff]  ;;  %v193_v23 = vld [vmem:[%s682_s9 + $0x48] sm:$0xff]  ;;  %s723_s10 = scalar_lea.hbm %s778_s2, %s345_s6  ;;  %p459_p8 = scmp.ne.s32.totalorder %s714_s4, %s458_s17 }
  0x40   : > { %228 = vst.msk [vmem:[%s697_s22 + $0x40] sm:$0xff] %vm219_vm0, %v192_v15  ;;  %229 = vst.msk [vmem:[%s697_s22 + $0x48] sm:$0xff] %vm219_vm0, %v193_v23  ;;  %p786_p9 = scmp.ne.s32.totalorder %s782_s23, 0  ;;  %s545_s19 = smov [#allocation6]  }
  0x41   : > { %s462_s20 = sshll.u32 %s545_s19, 4  ;;  %s463_s20 = int_to_ptr.vmem [resolvable:$false] %s462_s20 }
  0x42   : > { %v194_v1 = vstv %s183_s29  ;;  %p460_p11 = pnand %p459_p8, %p786_p9  ;;  %s464_s21 = scalar_lea.vmem %s463_s20, 2560 }
  0x43   : > { %v195_v4 = vmul.f32 %v194_v1, %v184_v0  ;;  %v196_v5 = vmul.f32 %v194_v1, %v185_v2  ;;  %v197_v6 = vmul.f32 %v194_v1, %v186_v3  ;;  %v198_v10 = vmul.f32 %v194_v1, %v187_v7  ;;  %p465_p5 = scmp.lt.s32.totalorder %s714_s4, %s463_s20  ;;  %p466_p13 = scmp.lt.s32.totalorder %s464_s21, %s458_s17 }
  0x44   : > { %v199_v11 = vmul.f32 %v194_v1, %v188_v8  ;;  %v200_v12 = vmul.f32 %v194_v1, %v189_v9  ;;  %v201_v19 = vmul.f32 %v194_v1, %v190_v13  ;;  %v202_v21 = vmul.f32 %v194_v1, %v191_v14  ;;  %p461_p0 = pneg %p460_p11 }
  0x45   : > { %v203_v16 = vmul.f32 1.442695, %v195_v4  ;;  %v205_v17 = vmul.f32 1.442695, %v196_v5  ;;  %v207_v18 = vmul.f32 1.442695, %v197_v6  ;;  %p467_p2 = por %p466_p13, %p465_p5 }
  0x46   : > { %v209_v20 = vmul.f32 1.442695, %v198_v10  ;;  %v211_v22 = vmul.f32 1.442695, %v199_v11  ;;  %v213_v24 = vmul.f32 1.442695, %v200_v12 }
  0x47   : > { %412 = vpow2.f32 %v203_v16  ;;  %v215_v25 = vmul.f32 1.442695, %v201_v19  ;;  %v217_v26 = vmul.f32 1.442695, %v202_v21  ;;  %p468_p4 = pnand %p467_p2, %p461_p0 }
  0x48   : > { %414 = vpow2.f32 %v205_v17 }
  0x49   : > { %416 = vpow2.f32 %v207_v18 }
  0x4a   : > { %418 = vpow2.f32 %v209_v20 }
  0x4b   : > { %420 = vpow2.f32 %v211_v22 }
  0x4c   : > { %422 = vpow2.f32 %v213_v24 }
  0x4d   : > { %424 = vpow2.f32 %v215_v25 }
  0x4e   : > { %426 = vpow2.f32 %v217_v26 }
  0x51   : > { %v413_v27 = vpop.eup %412 }
  0x52   : > { %v415_v28 = vpop.eup %414  ;;  %220 = vst.msk [vmem:[%s697_s22] sm:$0xff] %vm219_vm0, %v413_v27 }
  0x53   : > { %v417_v29 = vpop.eup %416  ;;  %221 = vst.msk [vmem:[%s697_s22 + $0x8] sm:$0xff] %vm219_vm0, %v415_v28 }
  0x54   : > { %v419_v30 = vpop.eup %418  ;;  %222 = vst.msk [vmem:[%s697_s22 + $0x10] sm:$0xff] %vm219_vm0, %v417_v29 }
  0x55   : > { %v421_v31 = vpop.eup %420  ;;  %223 = vst.msk [vmem:[%s697_s22 + $0x18] sm:$0xff] %vm219_vm0, %v419_v30 }
  0x56   : > { %v423_v32 = vpop.eup %422  ;;  %224 = vst.msk [vmem:[%s697_s22 + $0x20] sm:$0xff] %vm219_vm0, %v421_v31 }
  0x57   : > { %v425_v33 = vpop.eup %424  ;;  %225 = vst.msk [vmem:[%s697_s22 + $0x28] sm:$0xff] %vm219_vm0, %v423_v32 }
  0x58   : > { %v427_v34 = vpop.eup %426  ;;  %226 = vst.msk [vmem:[%s697_s22 + $0x30] sm:$0xff] %vm219_vm0, %v425_v33 }
  0x59   : > { %227 = vst.msk [vmem:[%s697_s22 + $0x38] sm:$0xff] %vm219_vm0, %v427_v34 }
  0x5a   : > { %471 = shalt.err (!%p468_p4)
}
  0x5b   : > { %s472_s26 = scalar_lea.hbm %s723_s10, 1280  ;;  %s476_s30 = scalar_lea.hbm %s778_s2, 2560 }
  0x5c   : > { %p473_p6 = scmp.ne.s32.totalorder %s723_s10, %s472_s26  ;;  %p477_p12 = scmp.lt.u32.totalorder %s723_s10, %s778_s2 }
  0x5d   : > { %p478_p1 = scmp.lt.u32.totalorder %s476_s30, %s472_s26  ;;  %p480_p8 = scmp.lt.u32.totalorder %s472_s26, %s723_s10 }
  0x5e   : > { %p474_p7 = pnand %p473_p6, %p786_p9 }
  0x5f   : > { %p479_p3 = por %p478_p1, %p477_p12 }
  0x60   : > { %p475_p10 = pneg %p474_p7 }
  0x61   : > { %p481_p11 = por %p480_p8, %p479_p3 }
  0x63   : > { %p482_p0 = pnand %p481_p11, %p475_p10 }
  0x65   : > { %485 = shalt.err (!%p482_p0)
}
  0x66   : > { %s546_s9 = smov 128   ;;  %s547_s29 = smov 8  }
  0x67   : > { %348 = dma.vmem_to_hbm [thread:$0]  (%p786_p9), %s714_s4, 1280, %s723_s10, %s231_s0, %s546_s9, %s546_s9, %s547_s29  }
  0x68 PF: > { %s261_s22 = sand.u32 1, %s520_s11   ;;  %p787_p5 = scmp.ne.s32.totalorder %s783_s25, 0 }
  0x69   : > { %p788_p13 = scmp.ge.s32.totalorder %s540_s16, 2  ;;  %s262_s6 = scalar_lea.sflag [#allocation5], %s261_s22 }
  0x6b   : > { %p355_p2 = pnand %p788_p13, %p787_p5 }
  0x6d   : > { %515 = dma.done.wait (!%p355_p2), %s262_s6, 1280  }
  0x6e   : > { %517 = vsyncadd (!%p355_p2), %s262_s6, 4294966016  ;;  %s19_s16 = sadd.s32 1, %s540_s16   ;;  %s789_s11 = smov %s524_s12 }
  0x6f   : > { %p16_p4 = scmp.ge.s32.totalorder %s19_s16, 4   ;;  %s790_s12 = smov %s528_s13 }
  0x70   : > { %s791_s13 = smov %s622_s24  ;;  %s792_s14 = smov %s536_s15 }
  0x71   : > { %s793_s15 = smov %s795_s18  ;;  %18 = sbr.rel (!%p16_p4) target bundleno = 8 (0x8), region = 73 }
  0x78   :  { %267 = vsyncpa [#allocation4], 1 }
  0x79   :  { %269 = vsyncpa [#allocation4 + $0x1], 1 }
  0x7a   :  { %270 = vsyncpa [#allocation5], 1 }
  0x7b   :  { %272 = vsyncpa [#allocation5 + $0x1], 1 }

</bundles_post_ra>
